<compile_context>
chip_gen: v7x
topology: tpu7x:2x2x1
jax: 0.10.0
libtpu: 0.0.40
codegen_flags: <defaults>
</compile_context>

<pallas_src>
import functools
import math

import jax
import jax.numpy as jnp
from jax.experimental import pallas as pl
from jax.experimental.pallas import tpu as pltpu


def _accuracy_kernel(labels_ref, preds_ref, corr_ref, wsum_ref, *,
                     logit_thr, encode_background_as_zeros, ignore_idx,
                     total_lanes, tm):
    # labels_ref: (1, 1, TM) int32
    # preds_ref:  (1, C, TM) preds dtype (native, no upcast in HBM)
    # corr_ref:   (1, 1, TM) f32 per-lane partial sum of (pred == label)
    # wsum_ref:   (1, 1, TM) f32 per-lane partial sum of (label != ignore_idx)
    j = pl.program_id(1)

    @pl.when(j == 0)
    def _():
        corr_ref[...] = jnp.zeros_like(corr_ref)
        wsum_ref[...] = jnp.zeros_like(wsum_ref)

    p = preds_ref[0]                                             # (C, TM)
    labels = labels_ref[0]                                       # (1, TM)
    num_classes = p.shape[0]

    max_val = jnp.max(p, axis=0, keepdims=True)                  # (1, TM)
    cls_idx = jax.lax.broadcasted_iota(jnp.int32, p.shape, 0)    # (C, TM)
    # first index attaining the max (matches argmax tie-breaking)
    argmax = jnp.min(jnp.where(p == max_val, cls_idx, num_classes),
                     axis=0, keepdims=True)                      # (1, TM) int32

    if encode_background_as_zeros:
        # any(sigmoid(p) > thr over classes)  <=>  max_c p > logit(thr)
        any_fg = max_val > logit_thr
        pred_labels = jnp.where(any_fg, argmax + 1, 0)
    else:
        pred_labels = argmax

    correct = (pred_labels == labels).astype(jnp.float32)        # (1, TM)
    w = (labels != ignore_idx).astype(jnp.float32)               # (1, TM)

    if total_lanes % tm != 0:
        # mask the ragged tail of the last lane tile (garbage lanes -> 0)
        lane = jax.lax.broadcasted_iota(jnp.int32, (1, tm), 1)
        in_range = (j * tm + lane) < total_lanes
        correct = jnp.where(in_range, correct, 0.0)
        w = jnp.where(in_range, w, 0.0)

    corr_ref[...] += correct[None]
    wsum_ref[...] += w[None]


def accuracy_forward(labels, preds, weights=None, *, total=0.0, count=0.0,
                     dim=1, ignore_idx=-1, threshold=0.5,
                     encode_background_as_zeros=True, max_lanes=None):
    """Functional equivalent of Accuracy.forward.

    Returns (value, new_total, new_count); value == new_total / new_count.
    """
    labels = labels.astype(jnp.int32)
    if dim != 1:
        # TODO(synk): non-default class dims pay a transpose; dim=1 (the
        # module default) streams preds in native layout with zero copies.
        preds = jnp.moveaxis(preds, dim, 1)

    num_classes = preds.shape[1]
    n = labels.shape[0]
    hw = 1
    for s in labels.shape[1:]:
        hw *= s

    # Pure row-major flattens (free view changes, no HBM traffic, no dtype
    # conversion of the dominant preds stream).
    p = preds.reshape(n, num_classes, hw)
    lab = labels.reshape(n, 1, hw)

    # Fold the sigmoid threshold into a logit-space constant at trace time.
    if threshold <= 0.0:
        logit_thr = -math.inf
    elif threshold >= 1.0:
        logit_thr = math.inf
    else:
        logit_thr = math.log(threshold / (1.0 - threshold))

    # Lane-tile size: as large as fits a conservative VMEM budget
    # (double-buffered preds + labels + two f32 output accumulators), so the
    # kernel is DMA-limited rather than per-step-overhead limited, while
    # staying safe under v5e's 16 MiB scoped default / v7x's 64 MiB VMEM.
    itemsize = p.dtype.itemsize
    budget = 8 * 1024 * 1024
    per_lane = 2 * (num_classes * itemsize + 4 + 2 * 4)
    max_tm = max(128, min(64 * 1024, (budget // per_lane) // 128 * 128))
    if max_lanes is not None:          # test hook: force small tiles
        max_tm = max_lanes
    tm = hw if hw <= max_tm else max_tm
    n_tiles = pl.cdiv(hw, tm)

    kernel = functools.partial(
        _accuracy_kernel,
        logit_thr=logit_thr,
        encode_background_as_zeros=encode_background_as_zeros,
        ignore_idx=ignore_idx,
        total_lanes=hw,
        tm=tm)

    out_shape = jax.ShapeDtypeStruct((n, 1, tm), jnp.float32)
    cost = pl.CostEstimate(
        flops=4 * n * num_classes * hw,
        transcendentals=0,
        bytes_accessed=int(p.size * itemsize + lab.size * 4 + 2 * n * tm * 4))

    corr_part, w_part = pl.pallas_call(
        kernel,
        out_shape=(out_shape, out_shape),
        grid=(n, n_tiles),
        in_specs=[
            pl.BlockSpec((1, 1, tm), lambda i, j: (i, 0, j)),
            pl.BlockSpec((1, num_classes, tm), lambda i, j: (i, 0, j)),
        ],
        out_specs=(
            pl.BlockSpec((1, 1, tm), lambda i, j: (i, 0, 0)),
            pl.BlockSpec((1, 1, tm), lambda i, j: (i, 0, 0)),
        ),
        compiler_params=pltpu.CompilerParams(
            dimension_semantics=("parallel", "arbitrary")),
        cost_estimate=cost,
    )(lab, p)

    sum_correct = jnp.sum(corr_part)
    if weights is None:
        sum_w = jnp.sum(w_part)
    else:
        # `total` is unweighted in the reference; explicit weights only feed
        # the example count, so a plain XLA sum over the small weights array
        # suffices.
        sum_w = jnp.sum(weights.astype(jnp.float32))

    num_examples = jnp.maximum(sum_w, 1.0)
    new_total = total + sum_correct
    new_count = count + num_examples
    value = new_total / new_count
    return value, new_total, new_count


def _reference(labels, preds, weights=None, *, threshold=0.5, ignore_idx=-1):
    scores = jax.nn.sigmoid(preds)
    labels_pred = jnp.argmax(preds, axis=1) + 1
    pred_labels = jnp.where(jnp.any(scores > threshold, axis=1), labels_pred, 0)
    n = labels.shape[0]
    lab2 = labels.reshape(n, -1)
    pred2 = pred_labels.reshape(n, -1)
    if weights is None:
        w = (lab2 != ignore_idx).astype(jnp.float32)
    else:
        w = weights.reshape(n, -1).astype(jnp.float32)
    ref_total = jnp.sum((pred2 == lab2).astype(jnp.float32))
    ref_count = jnp.maximum(jnp.sum(w), 1.0)
    return ref_total / ref_count, ref_total, ref_count


def _check(name, got, want, tol=1e-5):
    g, w = float(got), float(want)
    assert math.isfinite(g), (name, g)
    assert abs(g - w) <= tol * max(1.0, abs(w)), (name, g, w)


if __name__ == "__main__":
    key = jax.random.PRNGKey(0)

    # ---- test 1: module-default shapes, single lane tile -------------------
    N, C, H, W = 2, 4, 16, 16
    k1, k2, k3, k4, k5 = jax.random.split(key, 5)
    preds = jax.random.normal(k1, (N, C, H, W), jnp.float32)
    labels = jax.random.randint(k2, (N, H, W), -1, C + 1).astype(jnp.int32)

    fwd = jax.jit(accuracy_forward)
    value, new_total, new_count = fwd(labels, preds)
    jax.block_until_ready(value)

    ref_value, ref_total, ref_count = _reference(labels, preds)
    _check("t1.total", new_total, ref_total)
    _check("t1.count", new_count, ref_count)
    _check("t1.value", value, ref_value)

    # ---- test 2: multi-tile grid with ragged tail masking ------------------
    N2, C2, H2, W2 = 2, 4, 15, 20          # HW = 300 -> tiles of 128/128/44
    preds2 = jax.random.normal(k3, (N2, C2, H2, W2), jnp.float32)
    labels2 = jax.random.randint(k4, (N2, H2, W2), -1, C2 + 1).astype(jnp.int32)

    fwd_small = jax.jit(lambda l, p: accuracy_forward(l, p, max_lanes=128))
    value2, total2, count2 = fwd_small(labels2, preds2)
    jax.block_until_ready(value2)

    ref_value2, ref_total2, ref_count2 = _reference(labels2, preds2)
    _check("t2.total", total2, ref_total2)
    _check("t2.count", count2, ref_count2)
    _check("t2.value", value2, ref_value2)

    # ---- test 3: explicit weights path -------------------------------------
    weights = jax.random.uniform(k5, (N, H, W), jnp.float32)
    fwd_w = jax.jit(lambda l, p, w: accuracy_forward(l, p, w))
    value3, total3, count3 = fwd_w(labels, preds, weights)
    jax.block_until_ready(value3)

    ref_value3, ref_total3, ref_count3 = _reference(labels, preds, weights)
    _check("t3.total", total3, ref_total3, tol=1e-4)
    _check("t3.count", count3, ref_count3, tol=1e-4)
    _check("t3.value", value3, ref_value3, tol=1e-4)

    print("KERNEL_OK")
</pallas_src>

<mosaic_0001>
module attributes {stable_mosaic.version = 11 : i64} {
  func.func @_accuracy_kernel(%arg0: i32, %arg1: i32, %arg2: memref<1x1x256xi32, #tpu.memory_space<vmem>>, %arg3: memref<1x4x256xf32, #tpu.memory_space<vmem>>, %arg4: memref<1x1x256xf32, #tpu.memory_space<vmem>>, %arg5: memref<1x1x256xf32, #tpu.memory_space<vmem>>) attributes {dimension_semantics = [#tpu.dimension_semantics<parallel>, #tpu.dimension_semantics<arbitrary>], iteration_bounds = array<i64: 2, 1>, scalar_prefetch = 0 : i64, scratch_operands = 0 : i64, tpu.core_type = #tpu.core_type<tc>, window_params = [{transform_indices = @transform_0, window_bounds = array<i64: 1, 1, 256>}, {transform_indices = @transform_1, window_bounds = array<i64: 1, 4, 256>}, {transform_indices = @transform_2, window_bounds = array<i64: 1, 1, 256>}, {transform_indices = @transform_3, window_bounds = array<i64: 1, 1, 256>}]} {
    %c0_i32 = arith.constant 0 : i32
    %0 = arith.cmpi eq, %arg1, %c0_i32 : i32
    %1 = arith.extui %0 : i1 to i32
    %c0_i32_0 = arith.constant 0 : i32
    %2 = arith.cmpi ne, %1, %c0_i32_0 : i32
    scf.if %2 {
      %cst_21 = arith.constant 0.000000e+00 : f32
      %37 = vector.broadcast %cst_21 : f32 to vector<1x1x256xf32>
      %c0_22 = arith.constant 0 : index
      %c0_23 = arith.constant 0 : index
      %c0_24 = arith.constant 0 : index
      %38 = vector.load %arg4[%c0_22, %c0_23, %c0_24] : memref<1x1x256xf32, #tpu.memory_space<vmem>>, vector<1x1x256xf32>
      tpu.vector_store %arg4[%c0_22, %c0_23, %c0_24], %37 {strides = array<i32>} : memref<1x1x256xf32, #tpu.memory_space<vmem>>, vector<1x1x256xf32>,
      %cst_25 = arith.constant 0.000000e+00 : f32
      %39 = vector.broadcast %cst_25 : f32 to vector<1x1x256xf32>
      %c0_26 = arith.constant 0 : index
      %c0_27 = arith.constant 0 : index
      %c0_28 = arith.constant 0 : index
      %40 = vector.load %arg5[%c0_26, %c0_27, %c0_28] : memref<1x1x256xf32, #tpu.memory_space<vmem>>, vector<1x1x256xf32>
      tpu.vector_store %arg5[%c0_26, %c0_27, %c0_28], %39 {strides = array<i32>} : memref<1x1x256xf32, #tpu.memory_space<vmem>>, vector<1x1x256xf32>,
    } else {
    }
    %c0 = arith.constant 0 : index
    %c0_1 = arith.constant 0 : index
    %c0_2 = arith.constant 0 : index
    %3 = vector.load %arg3[%c0, %c0_1, %c0_2] : memref<1x4x256xf32, #tpu.memory_space<vmem>>, vector<1x4x256xf32>
    %4 = vector.shape_cast %3 : vector<1x4x256xf32> to vector<4x256xf32>
    %c0_3 = arith.constant 0 : index
    %c0_4 = arith.constant 0 : index
    %c0_5 = arith.constant 0 : index
    %5 = vector.load %arg2[%c0_3, %c0_4, %c0_5] : memref<1x1x256xi32, #tpu.memory_space<vmem>>, vector<1x1x256xi32>
    %6 = vector.shape_cast %5 : vector<1x1x256xi32> to vector<1x256xi32>
    %cst = arith.constant dense<0xFF800000> : vector<256xf32>
    %7 = vector.multi_reduction <maximumf>, %4, %cst [0] : vector<4x256xf32> to vector<256xf32>
    %8 = vector.shape_cast %7 : vector<256xf32> to vector<1x256xf32>
    %9 = tpu.iota {dimensions = array<i32: 0>} : vector<4x256xi32>
    %10 = vector.broadcast %8 : vector<1x256xf32> to vector<4x256xf32>
    %11 = arith.cmpf oeq, %4, %10 : vector<4x256xf32>
    %c4_i32 = arith.constant 4 : i32
    %12 = vector.broadcast %c4_i32 : i32 to vector<4x256xi32>
    %13 = arith.select %11, %9, %12 : vector<4x256xi1>, vector<4x256xi32>
    %cst_6 = arith.constant dense<2147483647> : vector<256xi32>
    %14 = vector.multi_reduction <minsi>, %13, %cst_6 [0] : vector<4x256xi32> to vector<256xi32>
    %15 = vector.shape_cast %14 : vector<256xi32> to vector<1x256xi32>
    %cst_7 = arith.constant 0.000000e+00 : f32
    %16 = vector.broadcast %cst_7 : f32 to vector<1x256xf32>
    %17 = arith.cmpf ogt, %8, %16 : vector<1x256xf32>
    %c1_i32 = arith.constant 1 : i32
    %18 = vector.broadcast %c1_i32 : i32 to vector<1x256xi32>
    %19 = arith.addi %15, %18 : vector<1x256xi32>
    %c0_i32_8 = arith.constant 0 : i32
    %20 = vector.broadcast %c0_i32_8 : i32 to vector<1x256xi32>
    %21 = arith.select %17, %19, %20 : vector<1x256xi1>, vector<1x256xi32>
    %22 = arith.cmpi eq, %21, %6 : vector<1x256xi32>
    %23 = arith.extui %22 : vector<1x256xi1> to vector<1x256xi32>
    %24 = arith.sitofp %23 : vector<1x256xi32> to vector<1x256xf32>
    %c-1_i32 = arith.constant -1 : i32
    %25 = vector.broadcast %c-1_i32 : i32 to vector<1x256xi32>
    %26 = arith.cmpi ne, %6, %25 : vector<1x256xi32>
    %27 = arith.extui %26 : vector<1x256xi1> to vector<1x256xi32>
    %28 = arith.sitofp %27 : vector<1x256xi32> to vector<1x256xf32>
    %c0_9 = arith.constant 0 : index
    %c0_10 = arith.constant 0 : index
    %c0_11 = arith.constant 0 : index
    %29 = vector.load %arg4[%c0_9, %c0_10, %c0_11] : memref<1x1x256xf32, #tpu.memory_space<vmem>>, vector<1x1x256xf32>
    %30 = vector.shape_cast %24 : vector<1x256xf32> to vector<1x1x256xf32>
    %31 = arith.addf %29, %30 : vector<1x1x256xf32>
    %c0_12 = arith.constant 0 : index
    %c0_13 = arith.constant 0 : index
    %c0_14 = arith.constant 0 : index
    %32 = vector.load %arg4[%c0_12, %c0_13, %c0_14] : memref<1x1x256xf32, #tpu.memory_space<vmem>>, vector<1x1x256xf32>
    tpu.vector_store %arg4[%c0_12, %c0_13, %c0_14], %31 {strides = array<i32>} : memref<1x1x256xf32, #tpu.memory_space<vmem>>, vector<1x1x256xf32>,
    %c0_15 = arith.constant 0 : index
    %c0_16 = arith.constant 0 : index
    %c0_17 = arith.constant 0 : index
    %33 = vector.load %arg5[%c0_15, %c0_16, %c0_17] : memref<1x1x256xf32, #tpu.memory_space<vmem>>, vector<1x1x256xf32>
    %34 = vector.shape_cast %28 : vector<1x256xf32> to vector<1x1x256xf32>
    %35 = arith.addf %33, %34 : vector<1x1x256xf32>
    %c0_18 = arith.constant 0 : index
    %c0_19 = arith.constant 0 : index
    %c0_20 = arith.constant 0 : index
    %36 = vector.load %arg5[%c0_18, %c0_19, %c0_20] : memref<1x1x256xf32, #tpu.memory_space<vmem>>, vector<1x1x256xf32>
    tpu.vector_store %arg5[%c0_18, %c0_19, %c0_20], %35 {strides = array<i32>} : memref<1x1x256xf32, #tpu.memory_space<vmem>>, vector<1x1x256xf32>,
    return
  }
  func.func @transform_0(%arg0: i32, %arg1: i32) -> (i32, i32, i32) {
    %c0_i32 = arith.constant 0 : i32
    %c0_i32_0 = arith.constant 0 : i32
    return %arg0, %c0_i32, %arg1 : i32, i32, i32
  }
  func.func @transform_1(%arg0: i32, %arg1: i32) -> (i32, i32, i32) {
    %c0_i32 = arith.constant 0 : i32
    %c0_i32_0 = arith.constant 0 : i32
    return %arg0, %c0_i32, %arg1 : i32, i32, i32
  }
  func.func @transform_2(%arg0: i32, %arg1: i32) -> (i32, i32, i32) {
    %c0_i32 = arith.constant 0 : i32
    %c0_i32_0 = arith.constant 0 : i32
    %c0_i32_1 = arith.constant 0 : i32
    return %arg0, %c0_i32, %c0_i32_0 : i32, i32, i32
  }
  func.func @transform_3(%arg0: i32, %arg1: i32) -> (i32, i32, i32) {
    %c0_i32 = arith.constant 0 : i32
    %c0_i32_0 = arith.constant 0 : i32
    %c0_i32_1 = arith.constant 0 : i32
    return %arg0, %c0_i32, %c0_i32_0 : i32, i32, i32
  }
}

</mosaic_0001>

<bundles_post_ra>
// kernel: accuracy_forward.1
= control target key start
LH: loop header
LB: loop body
LE: loop exit
PB: predicated region body
PF: predicated region fallthrough
CT: control target
= control target key end

     0   :  { %s562_s12 = smov 0   ;;  %s564_s13 = smov 0   ;;  %s627_s0 = inlined_call_operand.vmem [shape: s32[2,1,256], index: 0, kind: input, shape index: {}]   ;;  %s628_s1 = inlined_call_operand.vmem [shape: f32[2,4,256], index: 1, kind: input, shape index: {}]   ;;  %s629_s2 = inlined_call_operand.vmem [shape: f32[2,1,256], index: 2, kind: output, shape index: {0}]   ;;  %s630_s3 = inlined_call_operand.vmem [shape: f32[2,1,256], index: 3, kind: output, shape index: {1}]  }
   0x1   :  { %s566_s14 = smov 0  }
   0x2 LB: > { %s26_s15 = sadd.s32 1, %s533_s13  ;;  %p475_p0 = scmp.ge.s32.totalorder %s537_s14, 1  ;;  %s537_s14 = sphi %s566_s14, %s14_s14   ;;  %s533_s13 = sphi %s564_s13, %s634_s13   ;;  %s529_s12 = sphi %s562_s12, %s633_s12  }
   0x3   : > { %p28_p1 = scmp.ge.s32.totalorder %s26_s15, 2  ;;  %p175_p2 = scmp.lt.s32.totalorder %s537_s14, 3 }
   0x5   : > { %s636_s15 = smov (%p28_p1, %s26_s15), 0  ;;  %p176_p3 = pnand %p475_p0, %p175_p2 }
   0x6   : > { %p215_p4 = scmp.lt.s32.totalorder (!%p176_p3), %s529_s12, 1  ;;  %v245_v0 = vlaneseq (!%p176_p3)  ;;  %vm256_vm1 = vcmask (!%p176_p3), 1043456   ;;  %v539_v3 = vmov (!%p176_p3), 0.0   ;;  %v540_v9 = vmov (!%p176_p3), 839922192  }
   0x7   : > { %179 = sbr.rel (%p176_p3) target bundleno = 66 (0x42), region = 28  ;;  %v279_v10 = vunpack.c.l.s4 (!%p176_p3), %v540_v9  ;;  %v541_v45 = vmov (!%p176_p3), 1966171168  }
   0x8   : > { %vm580_vm0 = vcmp.lt.s32.totalorder (!%p176_p3), %v245_v0, 256  ;;  %v272_v16 = vshrl.u32 (!%p176_p3), %v245_v0, 7  ;;  %v335_v46 = vunpack.c.l.s4 (!%p176_p3), %v541_v45 }
   0x9   : > { %v280_v17 = vunpack.c.0.s8 (!%p176_p3), %v279_v10 }
   0xa   : > { %v315_v41 = vsub.s32 (!%p176_p3), 0, %v272_v16  ;;  %v319_v44 = vsub.s32 (!%p176_p3), 1, %v272_v16  ;;  %v336_v53 = vunpack.c.0.s8 (!%p176_p3), %v335_v46 }
   0xb   : > { %v283_v24 = vsub.s32 (!%p176_p3), %v280_v17, %v272_v16 }
   0xc   : > { %v339_v58 = vsub.s32 (!%p176_p3), %v336_v53, %v272_v16 }
   0xd   : > { %v284_v28 = vrot.slane (!%p176_p3), %v272_v16, %v283_v24 }
   0xe   : > { %s638_s12 = smov (!%p215_p4, %s529_s12), 1 }
   0xf   : > { %s476_s16 = sshll.u32 %s638_s12, 1  ;;  %s486_s17 = sshll.u32 %s638_s12, 3 }
  0x10   : > { %s221_s20 = scalar_lea.vmem %s627_s0, %s476_s16  ;;  %s231_s23 = scalar_lea.vmem %s628_s1, %s486_s17 }
  0x11   : > { %s593_s26 = scalar_lea.vmem %s629_s2, %s476_s16  ;;  %v251_v2 = vld [vmem:[%s231_s23] sm:$0xff]  ;;  %s240_s29 = scalar_lea.vmem %s630_s3, %s476_s16 }
  0x12   : > { %249 = vst.msk [vmem:[%s593_s26] sm:$0x3] %vm580_vm0, %v539_v3  ;;  %v254_v4 = vcombine.high %v251_v2, %v251_v2  ;;  %v257_v5 = vsel %vm256_vm1, %v251_v2, -inf  ;;  %250 = vst.msk [vmem:[%s240_s29] sm:$0x3] %vm580_vm0, %v539_v3 }
  0x13   : > { %v252_v6 = vld [vmem:[%s221_s20] sm:$0x3]  ;;  %v258_v7 = vrot.slane %v257_v5, 4 }
  0x14   : > { %v264_v8 = vsel %vm256_vm1, %v254_v4, -inf  ;;  %vm327_vm2 = vcmp.ne.s32.totalorder %v252_v6, 4294967295  ;;  %v316_v49 = vrot.slane %v252_v6, %v315_v41  ;;  %v320_v52 = vrot.slane %v252_v6, %v319_v44 }
  0x15   : > { %v259_v11 = vmax.f32 %v257_v5, %v258_v7  ;;  %v265_v12 = vrot.slane %v264_v8, 4  ;;  %v483_v15 = vsel %vm327_vm2, 1.0, %v539_v3 }
  0x17   : > { %v260_v13 = vrot.slane %v259_v11, 2  ;;  %v266_v14 = vmax.f32 %v264_v8, %v265_v12 }
  0x19   : > { %v261_v18 = vmax.f32 %v259_v11, %v260_v13  ;;  %v267_v19 = vrot.slane %v266_v14, 2  ;;  %v355_v20 = vld [vmem:[%s240_s29] sm:$0x3] }
  0x1a   : > { %v356_v21 = vadd.f32 %v483_v15, %v355_v20  ;;  %v330_v62 = vld [vmem:[%s593_s26] sm:$0x3] }
  0x1b   : > { %v262_v22 = vrot.slane %v261_v18, 1  ;;  %v268_v23 = vmax.f32 %v266_v14, %v267_v19 }
  0x1c   : > { %357 = vst.msk [vmem:[%s240_s29] sm:$0x3] %vm580_vm0, %v356_v21 }
  0x1d   : > { %v263_v25 = vmax.f32 %v261_v18, %v262_v22  ;;  %v269_v26 = vrot.slane %v268_v23, 1 }
  0x1f   : > { %v270_v27 = vmax.f32 %v268_v23, %v269_v26  ;;  %vm307_vm9 = vcmp.gt.f32.partialorder %v263_v25, 0.0 }
  0x21   : > { %v275_v29 = vcombine.low %v263_v25, %v270_v27  ;;  %vm308_vm11 = vcmp.gt.f32.partialorder %v270_v27, 0.0 }
  0x23   : > { %vm277_vm3 = vcmp.eq.f32.partialorder %v251_v2, %v275_v29 }
  0x24   : > { %v285_v30 = vsel %vm277_vm3, %v284_v28, 4 }
  0x25   : > { %v286_v31 = vcombine.high %v285_v30, %v285_v30  ;;  %v287_v32 = vsel %vm256_vm1, %v285_v30, 2147483647 }
  0x26   : > { %v288_v33 = vrot.slane %v287_v32, 4 }
  0x27   : > { %v297_v34 = vsel %vm256_vm1, %v286_v31, 2147483647 }
  0x28   : > { %vm289_vm4 = vcmp.lt.s32.totalorder %v287_v32, %v288_v33  ;;  %v298_v35 = vrot.slane %v297_v34, 4 }
  0x29   : > { %v290_v36 = vsel %vm289_vm4, %v287_v32, %v288_v33 }
  0x2a   : > { %v291_v37 = vrot.slane %v290_v36, 2  ;;  %vm299_vm5 = vcmp.lt.s32.totalorder %v297_v34, %v298_v35 }
  0x2b   : > { %v300_v38 = vsel %vm299_vm5, %v297_v34, %v298_v35 }
  0x2c   : > { %vm292_vm6 = vcmp.lt.s32.totalorder %v290_v36, %v291_v37  ;;  %v301_v39 = vrot.slane %v300_v38, 2 }
  0x2d   : > { %v293_v40 = vsel %vm292_vm6, %v290_v36, %v291_v37 }
  0x2e   : > { %v294_v42 = vrot.slane %v293_v40, 1  ;;  %vm302_vm7 = vcmp.lt.s32.totalorder %v300_v38, %v301_v39 }
  0x2f   : > { %v303_v43 = vsel %vm302_vm7, %v300_v38, %v301_v39 }
  0x30   : > { %vm295_vm8 = vcmp.lt.s32.totalorder %v293_v40, %v294_v42  ;;  %v304_v47 = vrot.slane %v303_v43, 1 }
  0x31   : > { %v296_v48 = vsel %vm295_vm8, %v293_v40, %v294_v42 }
  0x32   : > { %vm305_vm10 = vcmp.lt.s32.totalorder %v303_v43, %v304_v47  ;;  %v309_v50 = vadd.s32 1, %v296_v48 }
  0x33   : > { %v306_v51 = vsel %vm305_vm10, %v303_v43, %v304_v47 }
  0x34   : > { %v310_v54 = vadd.s32 1, %v306_v51  ;;  %v311_v55 = vsel %vm307_vm9, %v309_v50, 0 }
  0x35   : > { %vm321_vm12 = vcmp.eq.s32.totalorder %v311_v55, %v316_v49 }
  0x36   : > { %v312_v56 = vsel %vm308_vm11, %v310_v54, 0  ;;  %v481_v57 = vsel %vm321_vm12, 1.0, %v539_v3 }
  0x37   : > { %vm322_vm13 = vcmp.eq.s32.totalorder %v312_v56, %v320_v52 }
  0x38   : > { %v482_v59 = vsel %vm322_vm13, 1.0, %v539_v3 }
  0x39   : > { %v333_v60 = vcombine.low %v481_v57, %v482_v59 }
  0x3b   : > { %v340_v61 = vrot.slane %v333_v60, %v339_v58 }
  0x3d   : > { %v347_v63 = vrot.slane %v340_v61, %v339_v58 }
  0x3f   : > { %v349_v0 = vadd.f32 %v347_v63, %v330_v62 }
  0x41   : > { %354 = vst.msk [vmem:[%s593_s26] sm:$0x3] %vm580_vm0, %v349_v0 }
  0x42 PF: > { %s14_s14 = sadd.s32 1, %s537_s14   ;;  %s633_s12 = smov %s533_s13 }
  0x43   : > { %p11_p5 = scmp.ge.s32.totalorder %s14_s14, 4   ;;  %s634_s13 = smov %s636_s15 }
  0x45   :  { %13 = sbr.rel (!%p11_p5) target bundleno = 2 (0x2), region = 77 }

</bundles_post_ra>
